<compile_context>
chip_gen: v7x
topology: tpu7x:2x2x1
jax: 0.10.0
libtpu: 0.0.40
codegen_flags: <defaults>
</compile_context>

<pallas_src>
import functools

import jax
import jax.numpy as jnp
from jax.experimental import pallas as pl
from jax.experimental.pallas import tpu as pltpu

LANE = 128


# ------------------------------ kernel --------------------------------------
def if_neuron_kernel(x_ref, q_ref, acc_ref, out_ref, q_out_ref, acc_out_ref, *,
                     inv_threshold, threshold, pos_max, neg_min, eps):
    # All refs are (block_rows, 128) f32 tiles.
    x = x_ref[...] * inv_threshold            # input / q_threshold (mul by 1/s)
    q = q_ref[...] + x                        # integrate
    acc = jnp.round(acc_ref[...])             # torch.round (half-to-even)

    spike = (q - 1.0 >= 0.0) & (acc < pos_max)
    neg_spike = (q < -eps) & (acc > neg_min)

    # torch sets spike positions to +1 first, then neg positions to -1,
    # so neg_spike takes precedence (they are mutually exclusive for eps >= 0).
    cur = jnp.where(neg_spike, -1.0, jnp.where(spike, 1.0, 0.0))

    acc_out_ref[...] = acc + cur              # accumulated spike count
    q_out_ref[...] = q - cur                  # q[spike]-1, q[neg_spike]+1
    out_ref[...] = cur * threshold            # cur_output * q_threshold


# ------------------------------ wrapper -------------------------------------
def if_neuron_init_state(shape):
    """Matches the module's lazy init: q = 0.5, acc_q = 0, cur_output = 0."""
    q0 = jnp.full(shape, 0.5, dtype=jnp.float32)
    acc0 = jnp.zeros(shape, dtype=jnp.float32)
    return q0, acc0


@functools.partial(jax.jit,
                   static_argnames=("q_threshold", "level", "sym", "eps",
                                    "block_rows"))
def if_neuron_forward(x, q_state, acc_state, *, q_threshold, level, sym=False,
                      eps=0.0, block_rows=1024):
    """One IFNeuron timestep. Returns (output, new_q, new_acc_q), all x.shape."""
    orig_shape = x.shape
    n = int(x.size)

    # Lane-dense 2D layout: flatten, (pad if needed), view as (rows, 128) f32.
    rows_needed = pl.cdiv(n, LANE)
    br = min(block_rows, ((rows_needed + 7) // 8) * 8)   # block rows, mult of 8
    br = max(8, (br // 8) * 8)
    rows = pl.cdiv(rows_needed, br) * br
    padded = rows * LANE

    def to_slab(a):
        a = a.reshape(-1).astype(jnp.float32)
        if padded != n:
            a = jnp.pad(a, (0, padded - n))
        return a.reshape(rows, LANE)

    x2, q2, acc2 = to_slab(x), to_slab(q_state), to_slab(acc_state)

    # pos_max / neg_min exactly as in the PyTorch module.
    if sym:
        pos_max = float(level // 2 - 1)
        neg_min = float((-level) // 2)
    else:
        pos_max = float(level - 1)
        neg_min = 0.0

    kern = functools.partial(
        if_neuron_kernel,
        inv_threshold=float(1.0 / q_threshold),
        threshold=float(q_threshold),
        pos_max=pos_max, neg_min=neg_min, eps=float(eps))

    spec = pl.BlockSpec((br, LANE), lambda i: (i, 0))
    out_sds = jax.ShapeDtypeStruct((rows, LANE), jnp.float32)

    out, q_new, acc_new = pl.pallas_call(
        kern,
        out_shape=(out_sds, out_sds, out_sds),
        grid=(rows // br,),
        in_specs=[spec, spec, spec],
        out_specs=(spec, spec, spec),
        compiler_params=pltpu.CompilerParams(
            dimension_semantics=("parallel",),       # shard row tiles across TCs
            vmem_limit_bytes=32 * 1024 * 1024),      # tiny working set, explicit cap
        cost_estimate=pl.CostEstimate(
            flops=12 * padded,
            transcendentals=0,
            bytes_accessed=6 * padded * 4),          # 3 reads + 3 writes, f32
    )(x2, q2, acc2)

    def from_slab(a):
        return a.reshape(-1)[:n].reshape(orig_shape)

    # TODO(synk): the module's `is_work` flag / scalar-zero early-return is
    # host-side Python control flow on non-tensor state; no tensor compute to port.
    return from_slab(out), from_slab(q_new), from_slab(acc_new)


# --------------------------- pure-JAX reference ------------------------------
def if_neuron_ref(x, q, acc, *, q_threshold, level, sym=False, eps=0.0):
    if sym:
        pos_max = float(level // 2 - 1)
        neg_min = float((-level) // 2)
    else:
        pos_max = float(level - 1)
        neg_min = 0.0
    xs = x.astype(jnp.float32) / q_threshold
    q = q + xs
    acc = jnp.round(acc)
    spike = (q - 1.0 >= 0.0) & (acc < pos_max)
    neg = (q < -eps) & (acc > neg_min)
    cur = jnp.where(neg, -1.0, jnp.where(spike, 1.0, 0.0))
    return cur * q_threshold, q - cur, acc + cur


# ------------------------------- main ---------------------------------------
if __name__ == "__main__":
    B, C, H, W = 2, 4, 16, 16            # small activation-shaped input
    q_threshold = 0.25
    level = 8
    sym = True
    timesteps = 3

    key = jax.random.PRNGKey(0)
    x = jax.random.normal(key, (B, C, H, W), dtype=jnp.float32)

    q, acc = if_neuron_init_state((B, C, H, W))
    q_ref, acc_ref = q, acc
    out = out_r = None
    for _ in range(timesteps):
        out, q, acc = if_neuron_forward(
            x, q, acc, q_threshold=q_threshold, level=level, sym=sym)
        out_r, q_ref, acc_ref = if_neuron_ref(
            x, q_ref, acc_ref, q_threshold=q_threshold, level=level, sym=sym)

    jax.block_until_ready((out, q, acc))
    assert out.shape == (B, C, H, W) and out.dtype == jnp.float32
    # spikes are exactly {-q_threshold, 0, +q_threshold}
    assert bool(jnp.all((out == 0.0) | (jnp.abs(out) == q_threshold)))
    # matches the pure-JAX reference of the torch forward pass
    assert bool(jnp.allclose(out, out_r, atol=1e-6))
    assert bool(jnp.allclose(q, q_ref, atol=1e-6))
    assert bool(jnp.allclose(acc, acc_ref, atol=1e-6))
    print("KERNEL_OK")
</pallas_src>

<mosaic_0001>
module attributes {stable_mosaic.version = 11 : i64} {
  func.func @if_neuron_kernel(%arg0: i32, %arg1: memref<16x128xf32, #tpu.memory_space<vmem>>, %arg2: memref<16x128xf32, #tpu.memory_space<vmem>>, %arg3: memref<16x128xf32, #tpu.memory_space<vmem>>, %arg4: memref<16x128xf32, #tpu.memory_space<vmem>>, %arg5: memref<16x128xf32, #tpu.memory_space<vmem>>, %arg6: memref<16x128xf32, #tpu.memory_space<vmem>>) attributes {dimension_semantics = [#tpu.dimension_semantics<parallel>], iteration_bounds = array<i64: 1>, scalar_prefetch = 0 : i64, scratch_operands = 0 : i64, tpu.core_type = #tpu.core_type<tc>, window_params = [{transform_indices = @transform_0, window_bounds = array<i64: 16, 128>}, {transform_indices = @transform_1, window_bounds = array<i64: 16, 128>}, {transform_indices = @transform_2, window_bounds = array<i64: 16, 128>}, {transform_indices = @transform_3, window_bounds = array<i64: 16, 128>}, {transform_indices = @transform_4, window_bounds = array<i64: 16, 128>}, {transform_indices = @transform_5, window_bounds = array<i64: 16, 128>}]} {
    %c0 = arith.constant 0 : index
    %c0_0 = arith.constant 0 : index
    %0 = vector.load %arg1[%c0, %c0_0] : memref<16x128xf32, #tpu.memory_space<vmem>>, vector<16x128xf32>
    %cst = arith.constant 4.000000e+00 : f32
    %1 = vector.broadcast %cst : f32 to vector<16x128xf32>
    %2 = arith.mulf %0, %1 : vector<16x128xf32>
    %c0_1 = arith.constant 0 : index
    %c0_2 = arith.constant 0 : index
    %3 = vector.load %arg2[%c0_1, %c0_2] : memref<16x128xf32, #tpu.memory_space<vmem>>, vector<16x128xf32>
    %4 = arith.addf %3, %2 : vector<16x128xf32>
    %c0_3 = arith.constant 0 : index
    %c0_4 = arith.constant 0 : index
    %5 = vector.load %arg3[%c0_3, %c0_4] : memref<16x128xf32, #tpu.memory_space<vmem>>, vector<16x128xf32>
    %6 = math.roundeven %5 : vector<16x128xf32>
    %cst_5 = arith.constant 1.000000e+00 : f32
    %7 = vector.broadcast %cst_5 : f32 to vector<16x128xf32>
    %8 = arith.subf %4, %7 : vector<16x128xf32>
    %cst_6 = arith.constant 0.000000e+00 : f32
    %9 = vector.broadcast %cst_6 : f32 to vector<16x128xf32>
    %10 = arith.cmpf oge, %8, %9 : vector<16x128xf32>
    %cst_7 = arith.constant 3.000000e+00 : f32
    %11 = vector.broadcast %cst_7 : f32 to vector<16x128xf32>
    %12 = arith.cmpf olt, %6, %11 : vector<16x128xf32>
    %13 = arith.andi %10, %12 : vector<16x128xi1>
    %cst_8 = arith.constant -0.000000e+00 : f32
    %14 = vector.broadcast %cst_8 : f32 to vector<16x128xf32>
    %15 = arith.cmpf olt, %4, %14 : vector<16x128xf32>
    %cst_9 = arith.constant -4.000000e+00 : f32
    %16 = vector.broadcast %cst_9 : f32 to vector<16x128xf32>
    %17 = arith.cmpf ogt, %6, %16 : vector<16x128xf32>
    %18 = arith.andi %15, %17 : vector<16x128xi1>
    %cst_10 = arith.constant 1.000000e+00 : f32
    %cst_11 = arith.constant 0.000000e+00 : f32
    %19 = vector.broadcast %cst_10 : f32 to vector<16x128xf32>
    %20 = vector.broadcast %cst_11 : f32 to vector<16x128xf32>
    %21 = arith.select %13, %19, %20 : vector<16x128xi1>, vector<16x128xf32>
    %cst_12 = arith.constant -1.000000e+00 : f32
    %22 = vector.broadcast %cst_12 : f32 to vector<16x128xf32>
    %23 = arith.select %18, %22, %21 : vector<16x128xi1>, vector<16x128xf32>
    %24 = arith.addf %6, %23 : vector<16x128xf32>
    %c0_13 = arith.constant 0 : index
    %c0_14 = arith.constant 0 : index
    %25 = vector.load %arg6[%c0_13, %c0_14] : memref<16x128xf32, #tpu.memory_space<vmem>>, vector<16x128xf32>
    tpu.vector_store %arg6[%c0_13, %c0_14], %24 {strides = array<i32>} : memref<16x128xf32, #tpu.memory_space<vmem>>, vector<16x128xf32>,
    %26 = arith.subf %4, %23 : vector<16x128xf32>
    %c0_15 = arith.constant 0 : index
    %c0_16 = arith.constant 0 : index
    %27 = vector.load %arg5[%c0_15, %c0_16] : memref<16x128xf32, #tpu.memory_space<vmem>>, vector<16x128xf32>
    tpu.vector_store %arg5[%c0_15, %c0_16], %26 {strides = array<i32>} : memref<16x128xf32, #tpu.memory_space<vmem>>, vector<16x128xf32>,
    %cst_17 = arith.constant 2.500000e-01 : f32
    %28 = vector.broadcast %cst_17 : f32 to vector<16x128xf32>
    %29 = arith.mulf %23, %28 : vector<16x128xf32>
    %c0_18 = arith.constant 0 : index
    %c0_19 = arith.constant 0 : index
    %30 = vector.load %arg4[%c0_18, %c0_19] : memref<16x128xf32, #tpu.memory_space<vmem>>, vector<16x128xf32>
    tpu.vector_store %arg4[%c0_18, %c0_19], %29 {strides = array<i32>} : memref<16x128xf32, #tpu.memory_space<vmem>>, vector<16x128xf32>,
    return
  }
  func.func @transform_0(%arg0: i32) -> (i32, i32) {
    %c0_i32 = arith.constant 0 : i32
    %c0_i32_0 = arith.constant 0 : i32
    return %arg0, %c0_i32 : i32, i32
  }
  func.func @transform_1(%arg0: i32) -> (i32, i32) {
    %c0_i32 = arith.constant 0 : i32
    %c0_i32_0 = arith.constant 0 : i32
    return %arg0, %c0_i32 : i32, i32
  }
  func.func @transform_2(%arg0: i32) -> (i32, i32) {
    %c0_i32 = arith.constant 0 : i32
    %c0_i32_0 = arith.constant 0 : i32
    return %arg0, %c0_i32 : i32, i32
  }
  func.func @transform_3(%arg0: i32) -> (i32, i32) {
    %c0_i32 = arith.constant 0 : i32
    %c0_i32_0 = arith.constant 0 : i32
    return %arg0, %c0_i32 : i32, i32
  }
  func.func @transform_4(%arg0: i32) -> (i32, i32) {
    %c0_i32 = arith.constant 0 : i32
    %c0_i32_0 = arith.constant 0 : i32
    return %arg0, %c0_i32 : i32, i32
  }
  func.func @transform_5(%arg0: i32) -> (i32, i32) {
    %c0_i32 = arith.constant 0 : i32
    %c0_i32_0 = arith.constant 0 : i32
    return %arg0, %c0_i32 : i32, i32
  }
}

</mosaic_0001>

<bundles_post_ra>
// kernel: if_neuron_forward.1
= control target key start
LH: loop header
LB: loop body
LE: loop exit
PB: predicated region body
PF: predicated region fallthrough
CT: control target
= control target key end

     0   :  { %v76_v14 = vmov 0.0   ;;  %s143_s0 = inlined_call_operand.vmem [shape: f32[16,128], index: 0, kind: input, shape index: {}]   ;;  %s144_s1 = inlined_call_operand.vmem [shape: f32[16,128], index: 1, kind: input, shape index: {}]   ;;  %s145_s2 = inlined_call_operand.vmem [shape: f32[16,128], index: 2, kind: input, shape index: {}]   ;;  %s146_s5 = inlined_call_operand.vmem [shape: f32[16,128], index: 5, kind: output, shape index: {2}]   ;;  %s147_s4 = inlined_call_operand.vmem [shape: f32[16,128], index: 4, kind: output, shape index: {1}]   ;;  %s148_s3 = inlined_call_operand.vmem [shape: f32[16,128], index: 3, kind: output, shape index: {0}]  }
   0x1   :  { %v17_v0 = vld [vmem:[%s143_s0] sm:$0xff]  ;;  %v18_v5 = vld [vmem:[%s143_s0 + $0x8] sm:$0xff] }
   0x2   :  { %v21_v1 = vld [vmem:[%s144_s1] sm:$0xff]  ;;  %v19_v3 = vmul.f32 4.0, %v17_v0  ;;  %v22_v6 = vld [vmem:[%s144_s1 + $0x8] sm:$0xff]  ;;  %v20_v8 = vmul.f32 4.0, %v18_v5 }
   0x3   :  { %v25_v2 = vld [vmem:[%s145_s2] sm:$0xff]  ;;  %v26_v7 = vld [vmem:[%s145_s2 + $0x8] sm:$0xff] }
   0x4   :  { %v73_v4 = vround.rtne.f32 %v25_v2  ;;  %v74_v9 = vround.rtne.f32 %v26_v7  ;;  %v23_v10 = vadd.f32 %v21_v1, %v19_v3  ;;  %v24_v11 = vadd.f32 %v22_v6, %v20_v8 }
   0x6   :  { %vm39_vm0 = vcmp.gt.f32.partialorder %v73_v4, -4.0  ;;  %vm40_vm1 = vcmp.gt.f32.partialorder %v74_v9, -4.0  ;;  %v71_v12 = vadd.f32 -1.0, %v23_v10  ;;  %vm33_vm2 = vcmp.lt.f32.partialorder %v73_v4, 3.0 }
   0x7   :  { %vm37_vm3 = vcmp.lt.f32.partialorder %v23_v10, -0.0  ;;  %v72_v13 = vadd.f32 -1.0, %v24_v11  ;;  %vm34_vm5 = vcmp.lt.f32.partialorder %v74_v9, 3.0  ;;  %vm38_vm6 = vcmp.lt.f32.partialorder %v24_v11, -0.0 }
   0x8   :  { %vm41_vm4 = vmand %vm37_vm3, %vm39_vm0  ;;  %vm31_vm7 = vcmp.ge.f32.partialorder %v71_v12, 0.0 }
   0x9   :  { %vm42_vm8 = vmand %vm38_vm6, %vm40_vm1  ;;  %vm32_vm10 = vcmp.ge.f32.partialorder %v72_v13, 0.0 }
   0xa   :  { %vm35_vm9 = vmand %vm31_vm7, %vm33_vm2 }
   0xb   :  { %v43_v15 = vsel %vm35_vm9, 1.0, %v76_v14  ;;  %vm36_vm11 = vmand %vm32_vm10, %vm34_vm5 }
   0xc   :  { %v45_v16 = vsel %vm41_vm4, -1.0, %v43_v15  ;;  %v44_v17 = vsel %vm36_vm11, 1.0, %v76_v14 }
   0xd   :  { %v47_v18 = vadd.f32 %v73_v4, %v45_v16  ;;  %v46_v19 = vsel %vm42_vm8, -1.0, %v44_v17  ;;  %v51_v20 = vsub.f32 %v23_v10, %v45_v16  ;;  %v55_v21 = vmul.f32 0.25, %v45_v16 }
   0xe   :  { %v48_v22 = vadd.f32 %v74_v9, %v46_v19  ;;  %v52_v23 = vsub.f32 %v24_v11, %v46_v19  ;;  %v56_v24 = vmul.f32 0.25, %v46_v19 }
   0xf   :  { %49 = vst [vmem:[%s146_s5] sm:$0xff] %v47_v18  ;;  %53 = vst [vmem:[%s147_s4] sm:$0xff] %v51_v20 }
  0x10   :  { %57 = vst [vmem:[%s148_s3] sm:$0xff] %v55_v21  ;;  %50 = vst [vmem:[%s146_s5 + $0x8] sm:$0xff] %v48_v22 }
  0x11   :  { %54 = vst [vmem:[%s147_s4 + $0x8] sm:$0xff] %v52_v23  ;;  %58 = vst [vmem:[%s148_s3 + $0x8] sm:$0xff] %v56_v24 }

</bundles_post_ra>
